<compile_context>
chip_gen: v7x
topology: tpu7x:2x2x1
jax: 0.10.0
libtpu: 0.0.40
codegen_flags: <defaults>
</compile_context>

<pallas_src>
import functools

import jax
import jax.numpy as jnp
import numpy as np
from jax.experimental import pallas as pl
from jax.experimental.pallas import tpu as pltpu


def _round_up(x, m):
    return ((x + m - 1) // m) * m


def _noisy_linear_kernel(x_ref, wmu_ref, wsig_ref, weps_ref, beff_ref,
                         o_ref, acc_ref, *, mxu_bf16):
    """Grid = (O_tiles, I_tiles); the contraction axis (I = K) is last."""
    k = pl.program_id(1)

    @pl.when(k == 0)
    def _():
        acc_ref[...] = jnp.zeros_like(acc_ref)

    # Noise combine stays in f32 on the VPU. Weights are already (K, N), so the
    # MXU consumes them directly — no materialized transpose.
    w_eff = wmu_ref[...] + wsig_ref[...] * weps_ref[...]          # (tk, tn)
    x = x_ref[...]                                                # (tm, tk)
    if mxu_bf16:
        # Only the MXU operands drop to bf16; accumulation is f32.
        x = x.astype(jnp.bfloat16)
        w_eff = w_eff.astype(jnp.bfloat16)
    acc_ref[...] += jnp.dot(x, w_eff, preferred_element_type=jnp.float32)

    @pl.when(k == pl.num_programs(1) - 1)
    def _():
        o_ref[...] = (acc_ref[...] + beff_ref[...]).astype(o_ref.dtype)


def noisy_linear(x, weight_mu, weight_sigma, weight_eps,
                 bias_mu, bias_sigma, bias_eps, *, mxu_bf16=False):
    """Pallas-backed noisy linear forward.

    x:         (B, I) float32
    weight_*:  (O, I) float32
    bias_*:    (O,)   float32
    returns:   (B, O) float32
    """
    B, I = x.shape
    O = weight_mu.shape[0]

    # Effective bias computed once in the wrapper (one (1, O) input instead of 3).
    b_eff = (bias_mu + bias_sigma * bias_eps).astype(jnp.float32)

    # Pre-transpose weights to (I, O) so the kernel needs no transpose.
    wmu_t = weight_mu.T.astype(jnp.float32)
    wsig_t = weight_sigma.T.astype(jnp.float32)
    weps_t = weight_eps.T.astype(jnp.float32)

    # Tile/pad selection: lane dims (O, I) to multiples of 128 (cap tiles at 512
    # so double-buffered 3x weight tiles fit comfortably in v7x's 64 MiB VMEM),
    # batch (sublane dim) to a multiple of 8. Batch stays a single tile so the
    # noisy combine is done once per weight tile.
    def _pick(dim):
        p = _round_up(dim, 128)
        if p <= 512:
            return p, p
        t = 512
        return _round_up(p, t), t

    O_pad, tn = _pick(O)
    I_pad, tk = _pick(I)
    B_pad = _round_up(B, 8)
    # TODO(synk): for very large batches, add a batch grid axis and cache w_eff
    # in VMEM scratch instead of keeping the whole batch in one tile.

    xp = jnp.zeros((B_pad, I_pad), jnp.float32).at[:B, :I].set(x.astype(jnp.float32))
    wmu_p = jnp.zeros((I_pad, O_pad), jnp.float32).at[:I, :O].set(wmu_t)
    wsig_p = jnp.zeros((I_pad, O_pad), jnp.float32).at[:I, :O].set(wsig_t)
    weps_p = jnp.zeros((I_pad, O_pad), jnp.float32).at[:I, :O].set(weps_t)
    beff_p = jnp.zeros((1, O_pad), jnp.float32).at[0, :O].set(b_eff)

    grid = (O_pad // tn, I_pad // tk)

    # Advisory cost for XLA scheduling around the custom call.
    cost = pl.CostEstimate(
        flops=2 * B * O * I + 2 * O * I,
        transcendentals=0,
        bytes_accessed=4 * (B * I + 3 * O * I + O + B * O),
    )

    # VMEM budget: double-buffered x + 3 weight tiles + bias, plus out + f32 acc.
    vmem_bytes = 4 * (2 * B_pad * tk + 3 * 2 * tk * tn + 2 * tn
                      + 2 * B_pad * tn + B_pad * tn)
    vmem_limit = int(min(max(2 * vmem_bytes, 4 * 1024 * 1024), 48 * 1024 * 1024))

    kernel = functools.partial(_noisy_linear_kernel, mxu_bf16=mxu_bf16)

    out_pad = pl.pallas_call(
        kernel,
        out_shape=jax.ShapeDtypeStruct((B_pad, O_pad), jnp.float32),
        grid_spec=pltpu.PrefetchScalarGridSpec(
            num_scalar_prefetch=0,
            grid=grid,
            in_specs=[
                pl.BlockSpec((B_pad, tk), lambda j, k: (0, k)),   # x
                pl.BlockSpec((tk, tn), lambda j, k: (k, j)),      # weight_mu (K,N)
                pl.BlockSpec((tk, tn), lambda j, k: (k, j)),      # weight_sigma
                pl.BlockSpec((tk, tn), lambda j, k: (k, j)),      # weight_eps
                pl.BlockSpec((1, tn), lambda j, k: (0, j)),       # b_eff
            ],
            out_specs=pl.BlockSpec((B_pad, tn), lambda j, k: (0, j)),
            scratch_shapes=[pltpu.VMEM((B_pad, tn), jnp.float32)],
        ),
        compiler_params=pltpu.CompilerParams(
            dimension_semantics=("parallel", "arbitrary"),
            vmem_limit_bytes=vmem_limit,
        ),
        cost_estimate=cost,
    )(xp, wmu_p, wsig_p, weps_p, beff_p)

    return out_pad[:B, :O]


def init_noisy_linear_params(key, input_feature, output_feature, initial_std=0.5):
    """Deterministic parameter init mirroring the PyTorch module's __init__."""
    k_wmu, k_bmu, k_ein, k_eout = jax.random.split(key, 4)
    params_range = 1.0 / np.sqrt(input_feature)

    weight_mu = jax.random.uniform(
        k_wmu, (output_feature, input_feature), jnp.float32,
        minval=-params_range, maxval=params_range)
    bias_mu = jax.random.uniform(
        k_bmu, (output_feature,), jnp.float32,
        minval=-params_range, maxval=params_range)

    sigma_fill = initial_std / np.sqrt(input_feature)
    weight_sigma = jnp.full((output_feature, input_feature), sigma_fill, jnp.float32)
    bias_sigma = jnp.full((output_feature,), sigma_fill, jnp.float32)

    # Factorized Gaussian noise: f(e) = sign(e) * sqrt(|e|)
    eps_in = jax.random.normal(k_ein, (input_feature,), jnp.float32)
    eps_in = jnp.sign(eps_in) * jnp.sqrt(jnp.abs(eps_in))
    eps_out = jax.random.normal(k_eout, (output_feature,), jnp.float32)
    eps_out = jnp.sign(eps_out) * jnp.sqrt(jnp.abs(eps_out))

    weight_eps = jnp.outer(eps_out, eps_in)   # eps_out.ger(eps_in)
    bias_eps = eps_out

    return weight_mu, weight_sigma, weight_eps, bias_mu, bias_sigma, bias_eps


if __name__ == "__main__":
    key = jax.random.PRNGKey(0)
    k_params, k_x = jax.random.split(key)

    batch = 8
    input_feature = 32
    output_feature = 16
    initial_std = 0.5

    (weight_mu, weight_sigma, weight_eps,
     bias_mu, bias_sigma, bias_eps) = init_noisy_linear_params(
        k_params, input_feature, output_feature, initial_std)

    x = jax.random.normal(k_x, (batch, input_feature), jnp.float32)

    # Reference in plain JAX (same math as F.linear).
    w_eff = weight_mu + weight_sigma * weight_eps
    b_eff = bias_mu + bias_sigma * bias_eps
    y_ref = x @ w_eff.T + b_eff

    # f32 MXU path (exact).
    y = noisy_linear(x, weight_mu, weight_sigma, weight_eps,
                     bias_mu, bias_sigma, bias_eps, mxu_bf16=False)
    jax.block_until_ready(y)
    np.testing.assert_allclose(np.asarray(y), np.asarray(y_ref),
                               rtol=1e-5, atol=1e-5)

    # bf16-MXU path (v6e/v5e throughput option): combine/accumulate in f32,
    # only matmul operands in bf16 -> looser tolerance.
    y_bf16 = noisy_linear(x, weight_mu, weight_sigma, weight_eps,
                          bias_mu, bias_sigma, bias_eps, mxu_bf16=True)
    jax.block_until_ready(y_bf16)
    np.testing.assert_allclose(np.asarray(y_bf16), np.asarray(y_ref),
                               rtol=2e-2, atol=2e-2)

    print("KERNEL_OK")
</pallas_src>

<mosaic_0001>
module attributes {stable_mosaic.version = 11 : i64} {
  func.func @_noisy_linear_kernel(%arg0: i32, %arg1: i32, %arg2: memref<8x128xf32, #tpu.memory_space<vmem>>, %arg3: memref<128x128xf32, #tpu.memory_space<vmem>>, %arg4: memref<128x128xf32, #tpu.memory_space<vmem>>, %arg5: memref<128x128xf32, #tpu.memory_space<vmem>>, %arg6: memref<1x128xf32, #tpu.memory_space<vmem>>, %arg7: memref<8x128xf32, #tpu.memory_space<vmem>>, %arg8: memref<8x128xf32, #tpu.memory_space<vmem>>) attributes {dimension_semantics = [#tpu.dimension_semantics<parallel>, #tpu.dimension_semantics<arbitrary>], iteration_bounds = array<i64: 1, 1>, scalar_prefetch = 0 : i64, scratch_operands = 1 : i64, tpu.core_type = #tpu.core_type<tc>, window_params = [{transform_indices = @transform_0, window_bounds = array<i64: 8, 128>}, {transform_indices = @transform_1, window_bounds = array<i64: 128, 128>}, {transform_indices = @transform_2, window_bounds = array<i64: 128, 128>}, {transform_indices = @transform_3, window_bounds = array<i64: 128, 128>}, {transform_indices = @transform_4, window_bounds = array<i64: 1, 128>}, {transform_indices = @transform_5, window_bounds = array<i64: 8, 128>}]} {
    %c0_i32 = arith.constant 0 : i32
    %0 = arith.cmpi eq, %arg1, %c0_i32 : i32
    %1 = arith.extui %0 : i1 to i32
    %c0_i32_0 = arith.constant 0 : i32
    %2 = arith.cmpi ne, %1, %c0_i32_0 : i32
    scf.if %2 {
      %cst_14 = arith.constant 0.000000e+00 : f32
      %16 = vector.broadcast %cst_14 : f32 to vector<8x128xf32>
      %c0_15 = arith.constant 0 : index
      %c0_16 = arith.constant 0 : index
      %17 = vector.load %arg8[%c0_15, %c0_16] : memref<8x128xf32, #tpu.memory_space<vmem>>, vector<8x128xf32>
      tpu.vector_store %arg8[%c0_15, %c0_16], %16 {strides = array<i32>} : memref<8x128xf32, #tpu.memory_space<vmem>>, vector<8x128xf32>,
    } else {
    }
    %c0 = arith.constant 0 : index
    %c0_1 = arith.constant 0 : index
    %3 = vector.load %arg3[%c0, %c0_1] : memref<128x128xf32, #tpu.memory_space<vmem>>, vector<128x128xf32>
    %c0_2 = arith.constant 0 : index
    %c0_3 = arith.constant 0 : index
    %4 = vector.load %arg4[%c0_2, %c0_3] : memref<128x128xf32, #tpu.memory_space<vmem>>, vector<128x128xf32>
    %c0_4 = arith.constant 0 : index
    %c0_5 = arith.constant 0 : index
    %5 = vector.load %arg5[%c0_4, %c0_5] : memref<128x128xf32, #tpu.memory_space<vmem>>, vector<128x128xf32>
    %6 = arith.mulf %4, %5 : vector<128x128xf32>
    %7 = arith.addf %3, %6 : vector<128x128xf32>
    %c0_6 = arith.constant 0 : index
    %c0_7 = arith.constant 0 : index
    %8 = vector.load %arg2[%c0_6, %c0_7] : memref<8x128xf32, #tpu.memory_space<vmem>>, vector<8x128xf32>
    %c0_8 = arith.constant 0 : index
    %c0_9 = arith.constant 0 : index
    %9 = vector.load %arg8[%c0_8, %c0_9] : memref<8x128xf32, #tpu.memory_space<vmem>>, vector<8x128xf32>
    %cst = arith.constant dense<0.000000e+00> : vector<8x128xf32>
    %10 = tpu.matmul %8, %7, %cst {dimension_numbers = #tpu.dot_dimension_numbers<[1], [0], [0], [1], [0, 0, 1, 1], [], []>} : vector<8x128xf32>, vector<128x128xf32>, vector<8x128xf32> -> vector<8x128xf32>
    %11 = arith.addf %9, %10 : vector<8x128xf32>
    %c0_10 = arith.constant 0 : index
    %c0_11 = arith.constant 0 : index
    %12 = vector.load %arg8[%c0_10, %c0_11] : memref<8x128xf32, #tpu.memory_space<vmem>>, vector<8x128xf32>
    tpu.vector_store %arg8[%c0_10, %c0_11], %11 {strides = array<i32>} : memref<8x128xf32, #tpu.memory_space<vmem>>, vector<8x128xf32>,
    %c0_i32_12 = arith.constant 0 : i32
    %13 = arith.cmpi eq, %arg1, %c0_i32_12 : i32
    %14 = arith.extui %13 : i1 to i32
    %c0_i32_13 = arith.constant 0 : i32
    %15 = arith.cmpi ne, %14, %c0_i32_13 : i32
    scf.if %15 {
      %c0_14 = arith.constant 0 : index
      %c0_15 = arith.constant 0 : index
      %16 = vector.load %arg8[%c0_14, %c0_15] : memref<8x128xf32, #tpu.memory_space<vmem>>, vector<8x128xf32>
      %c0_16 = arith.constant 0 : index
      %c0_17 = arith.constant 0 : index
      %17 = vector.load %arg6[%c0_16, %c0_17] : memref<1x128xf32, #tpu.memory_space<vmem>>, vector<1x128xf32>
      %18 = vector.broadcast %17 : vector<1x128xf32> to vector<8x128xf32>
      %19 = arith.addf %16, %18 : vector<8x128xf32>
      %c0_18 = arith.constant 0 : index
      %c0_19 = arith.constant 0 : index
      %20 = vector.load %arg7[%c0_18, %c0_19] : memref<8x128xf32, #tpu.memory_space<vmem>>, vector<8x128xf32>
      tpu.vector_store %arg7[%c0_18, %c0_19], %19 {strides = array<i32>} : memref<8x128xf32, #tpu.memory_space<vmem>>, vector<8x128xf32>,
    } else {
    }
    return
  }
  func.func @transform_0(%arg0: i32, %arg1: i32) -> (i32, i32) {
    %c0_i32 = arith.constant 0 : i32
    %c0_i32_0 = arith.constant 0 : i32
    return %c0_i32, %arg1 : i32, i32
  }
  func.func @transform_1(%arg0: i32, %arg1: i32) -> (i32, i32) {
    %c0_i32 = arith.constant 0 : i32
    return %arg1, %arg0 : i32, i32
  }
  func.func @transform_2(%arg0: i32, %arg1: i32) -> (i32, i32) {
    %c0_i32 = arith.constant 0 : i32
    return %arg1, %arg0 : i32, i32
  }
  func.func @transform_3(%arg0: i32, %arg1: i32) -> (i32, i32) {
    %c0_i32 = arith.constant 0 : i32
    return %arg1, %arg0 : i32, i32
  }
  func.func @transform_4(%arg0: i32, %arg1: i32) -> (i32, i32) {
    %c0_i32 = arith.constant 0 : i32
    %c0_i32_0 = arith.constant 0 : i32
    return %c0_i32, %arg0 : i32, i32
  }
  func.func @transform_5(%arg0: i32, %arg1: i32) -> (i32, i32) {
    %c0_i32 = arith.constant 0 : i32
    %c0_i32_0 = arith.constant 0 : i32
    return %c0_i32, %arg0 : i32, i32
  }
}

</mosaic_0001>

<bundles_post_ra>
// kernel: tpu_custom_call.1
= control target key start
LH: loop header
LB: loop body
LE: loop exit
PB: predicated region body
PF: predicated region fallthrough
CT: control target
= control target key end

     0   :  { %10 = vsyncpa [#allocation4], 0  ;;  %s588_s0 = inlined_call_operand.hbm [shape: f32[8,128], index: 0, kind: input, shape index: {}]   ;;  %s589_s1 = inlined_call_operand.hbm [shape: f32[128,128], index: 1, kind: input, shape index: {}]   ;;  %s590_s2 = inlined_call_operand.hbm [shape: f32[128,128], index: 2, kind: input, shape index: {}]   ;;  %s591_s3 = inlined_call_operand.hbm [shape: f32[128,128], index: 3, kind: input, shape index: {}]   ;;  %s592_s4 = inlined_call_operand.vmem [shape: f32[1,128], index: 4, kind: input, shape index: {}]   ;;  %s593_s5 = inlined_call_operand.hbm [shape: f32[8,128], index: 5, kind: output, shape index: {}]  }
   0x1   :  { %11 = vsyncpa [#allocation7], 0 }
   0x2   :  { %12 = vsyncpa [#allocation10], 0 }
   0x3   :  { %13 = vsyncpa [#allocation5], 0  ;;  %s468_s18 = smov [#allocation6]   ;;  %s350_s22 = scalar_lea.hbm %s589_s1, 2048 }
   0x4   :  { %s29_s19 = sshll.u32 %s468_s18, 4  ;;  %p351_p0 = scmp.ne.s32.totalorder %s589_s1, %s350_s22  ;;  %s30_s19 = int_to_ptr.vmem [resolvable:$true] %s29_s19 }
   0x5   :  { %p354_p1 = scmp.lt.u32.totalorder %s350_s22, %s589_s1 }
   0x7   :  { %p356_p2 = pnand %p354_p1, %p351_p0 }
   0x9   :  { %359 = shalt.err (!%p356_p2)
}
   0xa   :  { %s360_s27 = scalar_lea.vmem %s30_s19, 2048  ;;  %p365_p4 = scmp.lt.s32.totalorder %s30_s19, %s30_s19 }
   0xb   :  { %p361_p3 = scmp.ne.s32.totalorder %s30_s19, %s360_s27  ;;  %p366_p5 = scmp.lt.s32.totalorder %s360_s27, %s360_s27 }
   0xd   :  { %p367_p6 = por %p366_p5, %p365_p4 }
   0xf   :  { %p368_p7 = pnand %p367_p6, %p361_p3 }
  0x11   :  { %371 = shalt.err (!%p368_p7)
}
  0x12   :  { %s469_s28 = smov 128   ;;  %s470_s29 = smov 8  }
  0x13   :  { %35 = dma.hbm_to_vmem [thread:$0]  %s589_s1, 2048, %s30_s19, [#allocation7], %s469_s28, %s469_s28, %s470_s29  }
  0x14   :  { %s471_s7 = smov [#allocation3]   ;;  %s472_s9 = smov [#allocation8]  }
  0x15   :  { %s20_s8 = sshll.u32 %s471_s7, 4  ;;  %s41_s10 = sshll.u32 %s472_s9, 4  ;;  %s21_s8 = int_to_ptr.vmem [resolvable:$true] %s20_s8  ;;  %s42_s10 = int_to_ptr.vmem [resolvable:$true] %s41_s10 }
  0x16   :  { %s372_s13 = scalar_lea.hbm %s588_s0, 128 }
  0x17   :  { %p373_p8 = scmp.ne.s32.totalorder %s588_s0, %s372_s13  ;;  %p376_p9 = scmp.lt.u32.totalorder %s372_s13, %s588_s0 }
  0x19   :  { %p378_p10 = pnand %p376_p9, %p373_p8 }
  0x1b   :  { %381 = shalt.err (!%p378_p10)
}
  0x1c   :  { %s382_s1 = scalar_lea.vmem %s21_s8, 128  ;;  %p387_p12 = scmp.lt.s32.totalorder %s21_s8, %s21_s8 }
  0x1d   :  { %p383_p11 = scmp.ne.s32.totalorder %s21_s8, %s382_s1  ;;  %p388_p13 = scmp.lt.s32.totalorder %s382_s1, %s382_s1 }
  0x1f   :  { %p389_p0 = por %p388_p13, %p387_p12 }
  0x21   :  { %p390_p1 = pnand %p389_p0, %p383_p11 }
  0x23   :  { %393 = shalt.err (!%p390_p1)
}
  0x24   :  { %23 = dma.hbm_to_vmem [thread:$0]  %s588_s0, 128, %s21_s8, [#allocation4]  }
  0x25   :  { %s394_s22 = scalar_lea.hbm %s590_s2, 2048 }
  0x26   :  { %p395_p2 = scmp.ne.s32.totalorder %s590_s2, %s394_s22  ;;  %p398_p3 = scmp.lt.u32.totalorder %s394_s22, %s590_s2 }
  0x28   :  { %p400_p4 = pnand %p398_p3, %p395_p2 }
  0x2a   :  { %403 = shalt.err (!%p400_p4)
}
  0x2b   :  { %s404_s27 = scalar_lea.vmem %s42_s10, 2048  ;;  %p409_p6 = scmp.lt.s32.totalorder %s42_s10, %s42_s10 }
  0x2c   :  { %p405_p5 = scmp.ne.s32.totalorder %s42_s10, %s404_s27  ;;  %p410_p7 = scmp.lt.s32.totalorder %s404_s27, %s404_s27 }
  0x2e   :  { %p411_p8 = por %p410_p7, %p409_p6 }
  0x30   :  { %p412_p9 = pnand %p411_p8, %p405_p5 }
  0x32   :  { %415 = shalt.err (!%p412_p9)
}
  0x33   :  { %47 = dma.hbm_to_vmem [thread:$0]  %s590_s2, 2048, %s42_s10, [#allocation7], %s469_s28, %s469_s28, %s470_s29  }
  0x34   :  { %s473_s6 = smov [#allocation9]   ;;  %s416_s11 = scalar_lea.hbm %s591_s3, 2048 }
  0x35   :  { %s53_s7 = sshll.u32 %s473_s6, 4  ;;  %p417_p10 = scmp.ne.s32.totalorder %s591_s3, %s416_s11  ;;  %s54_s7 = int_to_ptr.vmem [resolvable:$true] %s53_s7 }
  0x36   :  { %p420_p11 = scmp.lt.u32.totalorder %s416_s11, %s591_s3 }
  0x38   :  { %p422_p12 = pnand %p420_p11, %p417_p10 }
  0x3a   :  { %425 = shalt.err (!%p422_p12)
}
  0x3b   :  { %s426_s16 = scalar_lea.vmem %s54_s7, 2048  ;;  %p431_p0 = scmp.lt.s32.totalorder %s54_s7, %s54_s7 }
  0x3c   :  { %p427_p13 = scmp.ne.s32.totalorder %s54_s7, %s426_s16  ;;  %p432_p1 = scmp.lt.s32.totalorder %s426_s16, %s426_s16 }
  0x3e   :  { %p433_p2 = por %p432_p1, %p431_p0 }
  0x40   :  { %p434_p3 = pnand %p433_p2, %p427_p13 }
  0x42   :  { %437 = shalt.err (!%p434_p3)
}
  0x43   :  { %59 = dma.hbm_to_vmem [thread:$0]  %s591_s3, 2048, %s54_s7, [#allocation10], %s469_s28, %s469_s28, %s470_s29  }
  0x44   :  { %460 = dma.done.wait [#allocation4], 128  }
  0x45   :  { %461 = vsyncadd [#allocation4], 4294967168 }
  0x46   :  { %462 = dma.done.wait [#allocation7], 4096  }
  0x47   :  { %463 = vsyncadd [#allocation7], 4294963200 }
  0x48   :  { %464 = dma.done.wait [#allocation10], 2048  }
  0x49   :  { %465 = vsyncadd [#allocation10], 4294965248  ;;  %v474_v0 = vmov 0.0|0.0   ;;  %vm475_vm0 = vmmov 0   ;;  %v476_v1 = vmov 0.0   ;;  %v79_v2 = vld [vmem:[#allocation6] sm:$0xff] }
  0x4a   :  { %316 = vmatprep.subr.bf16.mxu0 %v474_v0  ;;  %313 = vmatprep.mubr.msk.f32.mxu0 %vm475_vm0, %v476_v1  ;;  %v80_v3 = vld [vmem:[#allocation6 + $0x8] sm:$0xff]  ;;  %v95_v4 = vld [vmem:[#allocation8] sm:$0xff]  ;;  %v81_v10 = vld [vmem:[#allocation6 + $0x10] sm:$0xff]  ;;  %s477_s29 = smov [#allocation11]  }
  0x4b   :  { %v96_v5 = vld [vmem:[#allocation8 + $0x8] sm:$0xff]  ;;  %v111_v6 = vld [vmem:[#allocation9] sm:$0xff]  ;;  %v82_v11 = vld [vmem:[#allocation6 + $0x18] sm:$0xff]  ;;  %s252_s17 = sshll.u32 %s477_s29, 4  ;;  %s253_s17 = int_to_ptr.vmem [resolvable:$true] %s252_s17 }
  0x4c   :  { %v112_v7 = vld [vmem:[#allocation9 + $0x8] sm:$0xff]  ;;  %v127_v8 = vmul.f32 %v111_v6, %v95_v4  ;;  %v97_v12 = vld [vmem:[#allocation8 + $0x10] sm:$0xff]  ;;  %v98_v13 = vld [vmem:[#allocation8 + $0x18] sm:$0xff]  ;;  %s438_s1 = scalar_lea.vmem %s253_s17, 128  ;;  %p443_p5 = scmp.lt.s32.totalorder %s253_s17, %s253_s17 }
  0x4d   :  { %v128_v9 = vmul.f32 %v112_v7, %v96_v5  ;;  %v113_v14 = vld [vmem:[#allocation9 + $0x10] sm:$0xff]  ;;  %v114_v15 = vld [vmem:[#allocation9 + $0x18] sm:$0xff]  ;;  %v83_v20 = vld [vmem:[#allocation6 + $0x20] sm:$0xff]  ;;  %p439_p4 = scmp.ne.s32.totalorder %s253_s17, %s438_s1  ;;  %p444_p6 = scmp.lt.s32.totalorder %s438_s1, %s438_s1 }
  0x4e   :  { %v143_v16 = vadd.f32 %v127_v8, %v79_v2  ;;  %v129_v18 = vmul.f32 %v113_v14, %v97_v12  ;;  %v130_v19 = vmul.f32 %v114_v15, %v98_v13  ;;  %v99_v21 = vld [vmem:[#allocation8 + $0x20] sm:$0xff]  ;;  %v100_v22 = vld [vmem:[#allocation8 + $0x28] sm:$0xff]  ;;  %v101_v30 = vld [vmem:[#allocation8 + $0x30] sm:$0xff] }
  0x4f   :  { %v144_v17 = vadd.f32 %v128_v9, %v80_v3  ;;  %v115_v23 = vld [vmem:[#allocation9 + $0x20] sm:$0xff]  ;;  %v116_v24 = vld [vmem:[#allocation9 + $0x28] sm:$0xff]  ;;  %v102_v32 = vld [vmem:[#allocation8 + $0x38] sm:$0xff]  ;;  %p445_p7 = por %p444_p6, %p443_p5 }
  0x50   :  { %v145_v26 = vadd.f32 %v129_v18, %v81_v10  ;;  %v146_v27 = vadd.f32 %v130_v19, %v82_v11  ;;  %v84_v28 = vld [vmem:[#allocation6 + $0x28] sm:$0xff]  ;;  %v131_v29 = vmul.f32 %v115_v23, %v99_v21  ;;  %v132_v31 = vmul.f32 %v116_v24, %v100_v22  ;;  %v117_v33 = vld [vmem:[#allocation9 + $0x30] sm:$0xff]  ;;  %v118_v34 = vld [vmem:[#allocation9 + $0x38] sm:$0xff] }
  0x51   :  { %v317_v25 = vpack.c.bf16 %v144_v17, %v143_v16  ;;  %v85_v37 = vld [vmem:[#allocation6 + $0x30] sm:$0xff]  ;;  %v86_v38 = vld [vmem:[#allocation6 + $0x38] sm:$0xff]  ;;  %v133_v39 = vmul.f32 %v117_v33, %v101_v30  ;;  %v134_v40 = vmul.f32 %v118_v34, %v102_v32  ;;  %v103_v41 = vld [vmem:[#allocation8 + $0x40] sm:$0xff]  ;;  %p446_p8 = pnand %p445_p7, %p439_p4 }
  0x52   :  { %v320_v35 = vpack.c.bf16 %v146_v27, %v145_v26  ;;  %v147_v36 = vadd.f32 %v131_v29, %v83_v20  ;;  %v148_v42 = vadd.f32 %v132_v31, %v84_v28  ;;  %v104_v43 = vld [vmem:[#allocation8 + $0x48] sm:$0xff]  ;;  %v119_v44 = vld [vmem:[#allocation9 + $0x40] sm:$0xff]  ;;  %v105_v53 = vld [vmem:[#allocation8 + $0x50] sm:$0xff] }
  0x53   :  { %318 = vmatpush3.bf16.msra.mxu0 %v317_v25  ;;  %v120_v45 = vld [vmem:[#allocation9 + $0x48] sm:$0xff]  ;;  %v149_v46 = vadd.f32 %v133_v39, %v85_v37  ;;  %v150_v47 = vadd.f32 %v134_v40, %v86_v38  ;;  %v87_v49 = vld [vmem:[#allocation6 + $0x40] sm:$0xff]  ;;  %v135_v51 = vmul.f32 %v119_v44, %v103_v41  ;;  %v106_v54 = vld [vmem:[#allocation8 + $0x58] sm:$0xff] }
  0x54   :  { %319 = vmatprep.subr.bf16.mxu0 %v474_v0  ;;  %v323_v48 = vpack.c.bf16 %v148_v42, %v147_v36  ;;  %v88_v50 = vld [vmem:[#allocation6 + $0x48] sm:$0xff]  ;;  %v136_v52 = vmul.f32 %v120_v45, %v104_v43  ;;  %v121_v55 = vld [vmem:[#allocation9 + $0x50] sm:$0xff]  ;;  %v122_v56 = vld [vmem:[#allocation9 + $0x58] sm:$0xff] }
  0x55   :  { %v326_v57 = vpack.c.bf16 %v150_v47, %v149_v46  ;;  %v151_v58 = vadd.f32 %v135_v51, %v87_v49  ;;  %v89_v60 = vld [vmem:[#allocation6 + $0x50] sm:$0xff]  ;;  %v137_v61 = vmul.f32 %v121_v55, %v105_v53  ;;  %v138_v62 = vmul.f32 %v122_v56, %v106_v54  ;;  %v107_v63 = vld [vmem:[#allocation8 + $0x60] sm:$0xff]  ;;  %v90_v2 = vld [vmem:[#allocation6 + $0x58] sm:$0xff] }
  0x56   :  { %v152_v59 = vadd.f32 %v136_v52, %v88_v50  ;;  %v123_v1 = vld [vmem:[#allocation9 + $0x60] sm:$0xff]  ;;  %v108_v3 = vld [vmem:[#allocation8 + $0x68] sm:$0xff]  ;;  %v109_v12 = vld [vmem:[#allocation8 + $0x70] sm:$0xff] }
  0x57   :  { %321 = vmatpush3.bf16.msra.mxu0 %v320_v35  ;;  %v124_v4 = vld [vmem:[#allocation9 + $0x68] sm:$0xff]  ;;  %v139_v5 = vmul.f32 %v123_v1, %v107_v63  ;;  %v153_v7 = vadd.f32 %v137_v61, %v89_v60  ;;  %v154_v8 = vadd.f32 %v138_v62, %v90_v2  ;;  %v91_v9 = vld [vmem:[#allocation6 + $0x60] sm:$0xff]  ;;  %v110_v13 = vld [vmem:[#allocation8 + $0x78] sm:$0xff] }
  0x58   :  { %322 = vmatprep.subr.bf16.mxu0 %v474_v0  ;;  %v329_v6 = vpack.c.bf16 %v152_v59, %v151_v58  ;;  %v92_v10 = vld [vmem:[#allocation6 + $0x68] sm:$0xff]  ;;  %v140_v11 = vmul.f32 %v124_v4, %v108_v3  ;;  %v125_v14 = vld [vmem:[#allocation9 + $0x70] sm:$0xff]  ;;  %v126_v15 = vld [vmem:[#allocation9 + $0x78] sm:$0xff] }
  0x59   :  { %v155_v16 = vadd.f32 %v139_v5, %v91_v9  ;;  %v332_v17 = vpack.c.bf16 %v154_v8, %v153_v7  ;;  %v141_v19 = vmul.f32 %v125_v14, %v109_v12  ;;  %v142_v20 = vmul.f32 %v126_v15, %v110_v13  ;;  %v93_v21 = vld [vmem:[#allocation6 + $0x70] sm:$0xff]  ;;  %v94_v22 = vld [vmem:[#allocation6 + $0x78] sm:$0xff] }
  0x5a   :  { %v156_v18 = vadd.f32 %v140_v11, %v92_v10  ;;  %v159_v27 = vld [vmem:[#allocation3] sm:$0xff] }
  0x5b   :  { %324 = vmatpush3.bf16.msra.mxu0 %v323_v48  ;;  %v157_v24 = vadd.f32 %v141_v19, %v93_v21  ;;  %v158_v25 = vadd.f32 %v142_v20, %v94_v22  ;;  %v263_v28 = vld [vmem:[%s592_s4] ss:$0 sm:$0xff] }
  0x5c   :  { %325 = vmatprep.subr.bf16.mxu0 %v474_v0  ;;  %v335_v23 = vpack.c.bf16 %v156_v18, %v155_v16 }
  0x5d   :  { %v338_v26 = vpack.c.bf16 %v158_v25, %v157_v24 }
  0x5f   :  { %327 = vmatpush3.bf16.msra.mxu0 %v326_v57 }
  0x60   :  { %328 = vmatprep.subr.bf16.mxu0 %v474_v0 }
  0x63   :  { %330 = vmatpush3.bf16.msra.mxu0 %v329_v6 }
  0x64   :  { %331 = vmatprep.subr.bf16.mxu0 %v474_v0 }
  0x67   :  { %333 = vmatpush3.bf16.msra.mxu0 %v332_v17 }
  0x68   :  { %334 = vmatprep.subr.bf16.mxu0 %v474_v0 }
  0x6b   :  { %336 = vmatpush3.bf16.msra.mxu0 %v335_v23 }
  0x6c   :  { %337 = vmatprep.subr.bf16.mxu0 %v474_v0 }
  0x6f   :  { %339 = vmatpush3.bf16.msra.mxu0 %v338_v26 }
  0x72   :  { %314 = vmatmul.mubr.f32.vlgmr.msra.gmra.mrb[0].mxu0 %v159_v27 }
 0x145   :  { %v227_v29 = vpop.f32.mrb[0].mxu0 }
 0x146   :  { %v244_v30 = vadd.f32 %v263_v28, %v227_v29  ;;  %v315_v31 = vpop.f32.mrb[1].mxu0 }
 0x148   :  { %245 = vst [vmem:[#allocation11] sm:$0xff] %v244_v30 }
 0x149   :  { %449 = shalt.err (!%p446_p8)
}
 0x14a   :  { %s450_s20 = scalar_lea.hbm %s593_s5, 128 }
 0x14b   :  { %p451_p9 = scmp.ne.s32.totalorder %s593_s5, %s450_s20  ;;  %p454_p10 = scmp.lt.u32.totalorder %s450_s20, %s593_s5 }
 0x14d   :  { %p456_p11 = pnand %p454_p10, %p451_p9 }
 0x14f   :  { %459 = shalt.err (!%p456_p11)
}
 0x150   :  { %255 = dma.vmem_to_hbm [thread:$0]  %s253_s17, 128, %s593_s5, [#allocation5]  }
 0x151   :  { %466 = dma.done.wait [#allocation5], 128  }
 0x152   :  { %467 = vsyncadd [#allocation5], 4294967168 }
 0x153   :  { %259 = vsyncpa [#allocation4], 1 }
 0x154   :  { %260 = vsyncpa [#allocation7], 1 }
 0x155   :  { %261 = vsyncpa [#allocation10], 1 }
 0x156   :  { %262 = vsyncpa [#allocation5], 1 }

</bundles_post_ra>
